<compile_context>
chip_gen: v6e
topology: v6e:2x2x1
jax: 0.10.0
libtpu: 0.0.40
codegen_flags: <defaults>
</compile_context>

<pallas_src>
import functools

import jax
import jax.numpy as jnp
from jax.experimental import pallas as pl
from jax.experimental.pallas import tpu as pltpu


def _round_up(x, m):
    return ((x + m - 1) // m) * m


def _vmem_budget_bytes():
    """Per-generation VMEM budget with headroom for compiler scratch."""
    cap = None
    try:
        info = pltpu.get_tpu_info()
        cap = getattr(info, "vmem_capacity_bytes", None)
    except Exception:
        cap = None
    if cap is None:
        cap = 64 * 1024 * 1024          # conservative fallback (v7x per-TC)
    if cap >= 96 * 1024 * 1024:
        return 96 * 1024 * 1024          # v5e / v6e (128 MiB physical)
    return max(32 * 1024 * 1024, (cap * 3) // 4)   # v7x (64 MiB) -> ~48 MiB


def _choose_tiles(max_batch, din, h, dout, x_bytes, w_bytes, out_bytes, sub, budget):
    """Pick (tm_cap, th, tn, dinp) so the double-buffered footprint fits `budget`."""
    dinp = _round_up(din, 128)
    tm = _round_up(min(max_batch, 512), sub)   # big batch tiles => fewer weight re-reads
    th = min(_round_up(h, 128), 512)           # hidden tile (MXU-friendly)
    tn = min(_round_up(dout, 128), 1024)       # Dout tile (lane-dense output)

    def footprint(tm, th, tn):
        return (2 * tm * dinp * x_bytes        # x tile (double-buffered)
                + 2 * dinp * th * w_bytes      # W1^T tile
                + 2 * th * tn * w_bytes        # W2^T tile
                + 2 * tm * tn * out_bytes      # output tile
                + tm * tn * 4                  # f32 accumulator (worst case)
                + 2 * (th + tn) * 4)           # bias tiles

    while footprint(tm, th, tn) > budget:
        c_tm = 2 * tm * dinp * x_bytes + 2 * tm * tn * out_bytes + tm * tn * 4
        c_th = 2 * dinp * th * w_bytes + 2 * th * tn * w_bytes
        c_tn = 2 * th * tn * w_bytes + 2 * tm * tn * out_bytes + tm * tn * 4
        cands = []
        if tn > 128:
            cands.append((c_tn, 2))
        if th > 128:
            cands.append((c_th, 1))
        if tm > sub:
            cands.append((c_tm, 0))
        if not cands:
            break
        which = max(cands)[1]
        if which == 2:
            tn = max(128, tn // 2)
        elif which == 1:
            th = max(128, th // 2)
        else:
            tm = max(sub, _round_up(tm // 2, sub))
    return tm, th, tn, dinp


def prepare_mlp_params(w1, b1, w2, b2, *, compute_dtype=None, max_batch=512):
    """One-time prep: transpose + pad weights, pick tiles.  Hoisted off the call path.

    PyTorch Linear layout: w1 (H, Din), b1 (H,), w2 (Dout, H), b2 (Dout,).
    """
    H, Din = w1.shape
    Dout, H2 = w2.shape
    assert H2 == H

    w_dtype = jnp.dtype(compute_dtype) if compute_dtype is not None else jnp.dtype(w1.dtype)
    w_bytes = w_dtype.itemsize
    x_bytes = w_bytes                      # activations are cast to the compute dtype
    out_bytes = 4                          # budget for f32 output blocks (worst case)
    sub = max(8, 32 // x_bytes)            # 8 for f32, 16 for bf16 sublane packing

    budget = _vmem_budget_bytes()
    tm_cap, th, tn, Dinp = _choose_tiles(max_batch, Din, H, Dout,
                                         x_bytes, w_bytes, out_bytes, sub, budget)

    # Pad UP to the tile sizes (keeps large MXU-friendly tiles even for awkward dims).
    Hp = _round_up(H, th)
    Doutp = _round_up(Dout, tn)

    w1t = jnp.pad(w1.T, ((0, Dinp - Din), (0, Hp - H))).astype(w_dtype)      # (Dinp, Hp)
    w2t = jnp.pad(w2.T, ((0, Hp - H), (0, Doutp - Dout))).astype(w_dtype)    # (Hp, Doutp)
    b1p = jnp.pad(b1, (0, Hp - H)).reshape(1, Hp).astype(jnp.float32)
    b2p = jnp.pad(b2, (0, Doutp - Dout)).reshape(1, Doutp).astype(jnp.float32)

    return {
        "w1t": w1t, "b1": b1p, "w2t": w2t, "b2": b2p,
        "din": Din, "dout": Dout,
        "tm_cap": tm_cap, "th": th, "tn": tn, "sub": sub,
        "vmem_limit": budget,
    }


def _mlp_kernel_f32_out(x_ref, w1t_ref, b1_ref, w2t_ref, b2_ref, o_ref):
    """f32 output: accumulate directly into the resident output block (no scratch)."""
    j = pl.program_id(2)

    h = jnp.dot(x_ref[...], w1t_ref[...], preferred_element_type=jnp.float32)
    h = jnp.maximum(h + b1_ref[...], 0.0)
    if h.dtype != w2t_ref.dtype:
        h = h.astype(w2t_ref.dtype)
    partial = jnp.dot(h, w2t_ref[...], preferred_element_type=jnp.float32)

    @pl.when(j == 0)
    def _():
        o_ref[...] = partial + b2_ref[...]

    @pl.when(j != 0)
    def _():
        o_ref[...] += partial


def _mlp_kernel_acc(x_ref, w1t_ref, b1_ref, w2t_ref, b2_ref, o_ref, acc_ref):
    """Low-precision output: accumulate in an f32 scratch, cast once at the end."""
    j = pl.program_id(2)

    @pl.when(j == 0)
    def _():
        acc_ref[...] = jnp.zeros_like(acc_ref)

    h = jnp.dot(x_ref[...], w1t_ref[...], preferred_element_type=jnp.float32)
    h = jnp.maximum(h + b1_ref[...], 0.0)
    if h.dtype != w2t_ref.dtype:
        h = h.astype(w2t_ref.dtype)
    acc_ref[...] += jnp.dot(h, w2t_ref[...], preferred_element_type=jnp.float32)

    @pl.when(j == pl.num_programs(2) - 1)
    def _():
        o_ref[...] = (acc_ref[...] + b2_ref[...]).astype(o_ref.dtype)


@functools.partial(
    jax.jit,
    static_argnames=("din", "dout", "tm_cap", "th", "tn", "sub", "vmem_limit"),
)
def _mlp_forward_padded(x, w1t, b1, w2t, b2, *, din, dout, tm_cap, th, tn, sub,
                        vmem_limit):
    B, Din = x.shape
    assert Din == din, "input feature dim does not match prepared params"
    Dinp, Hp = w1t.shape
    Doutp = w2t.shape[1]
    out_dtype = x.dtype

    # Batch tile: as large as the cap allows (fewer weight re-reads), padded batch.
    tm = min(tm_cap, _round_up(B, sub))
    Bp = _round_up(B, tm)

    x_p = jnp.pad(x, ((0, Bp - B), (0, Dinp - Din)))
    if x_p.dtype != w1t.dtype:
        x_p = x_p.astype(w1t.dtype)

    grid = (Bp // tm, Doutp // tn, Hp // th)   # reduction axis (hidden) last

    in_specs = [
        pl.BlockSpec((tm, Dinp), lambda i, n, j: (i, 0)),   # x batch tile
        pl.BlockSpec((Dinp, th), lambda i, n, j: (0, j)),   # W1^T column tile
        pl.BlockSpec((1, th), lambda i, n, j: (0, j)),      # b1 tile
        pl.BlockSpec((th, tn), lambda i, n, j: (j, n)),     # W2^T tile
        pl.BlockSpec((1, tn), lambda i, n, j: (0, n)),      # b2 tile
    ]
    out_spec = pl.BlockSpec((tm, tn), lambda i, n, j: (i, n))

    if jnp.dtype(out_dtype) == jnp.float32:
        kernel = _mlp_kernel_f32_out
        scratch = []
    else:
        kernel = _mlp_kernel_acc
        scratch = [pltpu.VMEM((tm, tn), jnp.float32)]

    out_p = pl.pallas_call(
        kernel,
        out_shape=jax.ShapeDtypeStruct((Bp, Doutp), out_dtype),
        grid_spec=pltpu.PrefetchScalarGridSpec(
            num_scalar_prefetch=0,
            grid=grid,
            in_specs=in_specs,
            out_specs=out_spec,
            scratch_shapes=scratch,
        ),
        compiler_params=pltpu.CompilerParams(
            dimension_semantics=("parallel", "parallel", "arbitrary"),
            vmem_limit_bytes=int(vmem_limit),
        ),
    )(x_p, w1t, b1, w2t, b2)

    return out_p[:B, :dout]


def mlp_forward(x, params):
    """h = relu(x @ W1^T + b1); y = h @ W2^T + b2  (PyTorch Linear semantics)."""
    return _mlp_forward_padded(
        x, params["w1t"], params["b1"], params["w2t"], params["b2"],
        din=params["din"], dout=params["dout"],
        tm_cap=params["tm_cap"], th=params["th"], tn=params["tn"],
        sub=params["sub"], vmem_limit=params["vmem_limit"],
    )


def mlp_ref(x, w1, b1, w2, b2):
    h = jnp.maximum(x @ w1.T + b1, 0.0)
    return h @ w2.T + b2


if __name__ == "__main__":
    key = jax.random.PRNGKey(0)

    # --- Main test: batch=8, in_dim=32 (MLP is square: in_dim -> in_dim -> in_dim)
    B, D = 8, 32
    kx, kw1, kb1, kw2, kb2, kx2, kw3, kb3, kw4, kb4 = jax.random.split(key, 10)
    bound = 1.0 / (D ** 0.5)
    x = jax.random.normal(kx, (B, D), dtype=jnp.float32)
    w1 = jax.random.uniform(kw1, (D, D), jnp.float32, -bound, bound)
    b1 = jax.random.uniform(kb1, (D,), jnp.float32, -bound, bound)
    w2 = jax.random.uniform(kw2, (D, D), jnp.float32, -bound, bound)
    b2 = jax.random.uniform(kb2, (D,), jnp.float32, -bound, bound)

    params = prepare_mlp_params(w1, b1, w2, b2)      # one-time transpose/pad/tile pick
    out = jax.block_until_ready(mlp_forward(x, params))
    ref = mlp_ref(x, w1, b1, w2, b2)
    assert out.shape == (B, D)
    assert jnp.allclose(out, ref, atol=1e-5, rtol=1e-5), "mismatch vs reference (aligned)"

    # --- Second test: non-aligned dims exercise the padding path (batch=5, in_dim=19)
    B2, D2 = 5, 19
    bound2 = 1.0 / (D2 ** 0.5)
    x2 = jax.random.normal(kx2, (B2, D2), dtype=jnp.float32)
    w3 = jax.random.uniform(kw3, (D2, D2), jnp.float32, -bound2, bound2)
    b3 = jax.random.uniform(kb3, (D2,), jnp.float32, -bound2, bound2)
    w4 = jax.random.uniform(kw4, (D2, D2), jnp.float32, -bound2, bound2)
    b4 = jax.random.uniform(kb4, (D2,), jnp.float32, -bound2, bound2)

    params2 = prepare_mlp_params(w3, b3, w4, b4)
    out2 = jax.block_until_ready(mlp_forward(x2, params2))
    ref2 = mlp_ref(x2, w3, b3, w4, b4)
    assert out2.shape == (B2, D2)
    assert jnp.allclose(out2, ref2, atol=1e-5, rtol=1e-5), "mismatch vs reference (padded)"

    print("KERNEL_OK")
</pallas_src>

<mosaic_0001>
module attributes {stable_mosaic.version = 11 : i64} {
  func.func @_mlp_kernel_f32_out(%arg0: i32, %arg1: i32, %arg2: i32, %arg3: memref<8x128xf32, #tpu.memory_space<vmem>>, %arg4: memref<128x128xf32, #tpu.memory_space<vmem>>, %arg5: memref<1x128xf32, #tpu.memory_space<vmem>>, %arg6: memref<128x128xf32, #tpu.memory_space<vmem>>, %arg7: memref<1x128xf32, #tpu.memory_space<vmem>>, %arg8: memref<8x128xf32, #tpu.memory_space<vmem>>) attributes {dimension_semantics = [#tpu.dimension_semantics<parallel>, #tpu.dimension_semantics<parallel>, #tpu.dimension_semantics<arbitrary>], iteration_bounds = array<i64: 1, 1, 1>, scalar_prefetch = 0 : i64, scratch_operands = 0 : i64, tpu.core_type = #tpu.core_type<tc>, window_params = [{transform_indices = @transform_0, window_bounds = array<i64: 8, 128>}, {transform_indices = @transform_1, window_bounds = array<i64: 128, 128>}, {transform_indices = @transform_2, window_bounds = array<i64: 1, 128>}, {transform_indices = @transform_3, window_bounds = array<i64: 128, 128>}, {transform_indices = @transform_4, window_bounds = array<i64: 1, 128>}, {transform_indices = @transform_5, window_bounds = array<i64: 8, 128>}]} {
    %c0 = arith.constant 0 : index
    %c0_0 = arith.constant 0 : index
    %0 = vector.load %arg3[%c0, %c0_0] : memref<8x128xf32, #tpu.memory_space<vmem>>, vector<8x128xf32>
    %c0_1 = arith.constant 0 : index
    %c0_2 = arith.constant 0 : index
    %1 = vector.load %arg4[%c0_1, %c0_2] : memref<128x128xf32, #tpu.memory_space<vmem>>, vector<128x128xf32>
    %cst = arith.constant dense<0.000000e+00> : vector<8x128xf32>
    %2 = tpu.matmul %0, %1, %cst {dimension_numbers = #tpu.dot_dimension_numbers<[1], [0], [0], [1], [0, 0, 1, 1], [], []>} : vector<8x128xf32>, vector<128x128xf32>, vector<8x128xf32> -> vector<8x128xf32>
    %c0_3 = arith.constant 0 : index
    %c0_4 = arith.constant 0 : index
    %3 = vector.load %arg5[%c0_3, %c0_4] : memref<1x128xf32, #tpu.memory_space<vmem>>, vector<1x128xf32>
    %4 = vector.broadcast %3 : vector<1x128xf32> to vector<8x128xf32>
    %5 = arith.addf %2, %4 : vector<8x128xf32>
    %cst_5 = arith.constant 0.000000e+00 : f32
    %6 = vector.broadcast %cst_5 : f32 to vector<8x128xf32>
    %7 = arith.maximumf %5, %6 : vector<8x128xf32>
    %c0_6 = arith.constant 0 : index
    %c0_7 = arith.constant 0 : index
    %8 = vector.load %arg6[%c0_6, %c0_7] : memref<128x128xf32, #tpu.memory_space<vmem>>, vector<128x128xf32>
    %cst_8 = arith.constant dense<0.000000e+00> : vector<8x128xf32>
    %9 = tpu.matmul %7, %8, %cst_8 {dimension_numbers = #tpu.dot_dimension_numbers<[1], [0], [0], [1], [0, 0, 1, 1], [], []>} : vector<8x128xf32>, vector<128x128xf32>, vector<8x128xf32> -> vector<8x128xf32>
    %c0_i32 = arith.constant 0 : i32
    %10 = arith.cmpi eq, %arg2, %c0_i32 : i32
    %11 = arith.extui %10 : i1 to i32
    %c0_i32_9 = arith.constant 0 : i32
    %12 = arith.cmpi ne, %11, %c0_i32_9 : i32
    scf.if %12 {
      %c0_12 = arith.constant 0 : index
      %c0_13 = arith.constant 0 : index
      %16 = vector.load %arg7[%c0_12, %c0_13] : memref<1x128xf32, #tpu.memory_space<vmem>>, vector<1x128xf32>
      %17 = vector.broadcast %16 : vector<1x128xf32> to vector<8x128xf32>
      %18 = arith.addf %9, %17 : vector<8x128xf32>
      %c0_14 = arith.constant 0 : index
      %c0_15 = arith.constant 0 : index
      %19 = vector.load %arg8[%c0_14, %c0_15] : memref<8x128xf32, #tpu.memory_space<vmem>>, vector<8x128xf32>
      tpu.vector_store %arg8[%c0_14, %c0_15], %18 {strides = array<i32>} : memref<8x128xf32, #tpu.memory_space<vmem>>, vector<8x128xf32>,
    } else {
    }
    %c0_i32_10 = arith.constant 0 : i32
    %13 = arith.cmpi ne, %arg2, %c0_i32_10 : i32
    %14 = arith.extui %13 : i1 to i32
    %c0_i32_11 = arith.constant 0 : i32
    %15 = arith.cmpi ne, %14, %c0_i32_11 : i32
    scf.if %15 {
      %c0_12 = arith.constant 0 : index
      %c0_13 = arith.constant 0 : index
      %16 = vector.load %arg8[%c0_12, %c0_13] : memref<8x128xf32, #tpu.memory_space<vmem>>, vector<8x128xf32>
      %17 = arith.addf %16, %9 : vector<8x128xf32>
      %c0_14 = arith.constant 0 : index
      %c0_15 = arith.constant 0 : index
      %18 = vector.load %arg8[%c0_14, %c0_15] : memref<8x128xf32, #tpu.memory_space<vmem>>, vector<8x128xf32>
      tpu.vector_store %arg8[%c0_14, %c0_15], %17 {strides = array<i32>} : memref<8x128xf32, #tpu.memory_space<vmem>>, vector<8x128xf32>,
    } else {
    }
    return
  }
  func.func @transform_0(%arg0: i32, %arg1: i32, %arg2: i32) -> (i32, i32) {
    %c0_i32 = arith.constant 0 : i32
    %c0_i32_0 = arith.constant 0 : i32
    return %arg0, %c0_i32 : i32, i32
  }
  func.func @transform_1(%arg0: i32, %arg1: i32, %arg2: i32) -> (i32, i32) {
    %c0_i32 = arith.constant 0 : i32
    %c0_i32_0 = arith.constant 0 : i32
    return %c0_i32, %arg2 : i32, i32
  }
  func.func @transform_2(%arg0: i32, %arg1: i32, %arg2: i32) -> (i32, i32) {
    %c0_i32 = arith.constant 0 : i32
    %c0_i32_0 = arith.constant 0 : i32
    return %c0_i32, %arg2 : i32, i32
  }
  func.func @transform_3(%arg0: i32, %arg1: i32, %arg2: i32) -> (i32, i32) {
    %c0_i32 = arith.constant 0 : i32
    return %arg2, %arg1 : i32, i32
  }
  func.func @transform_4(%arg0: i32, %arg1: i32, %arg2: i32) -> (i32, i32) {
    %c0_i32 = arith.constant 0 : i32
    %c0_i32_0 = arith.constant 0 : i32
    return %c0_i32, %arg1 : i32, i32
  }
  func.func @transform_5(%arg0: i32, %arg1: i32, %arg2: i32) -> (i32, i32) {
    %c0_i32 = arith.constant 0 : i32
    return %arg0, %arg1 : i32, i32
  }
}

</mosaic_0001>

<bundles_post_ra>
// kernel: _mlp_forward_padded.1
= control target key start
LH: loop header
LB: loop body
LE: loop exit
PB: predicated region body
PF: predicated region fallthrough
CT: control target
= control target key end

     0   :  { %10 = vsyncpa [#allocation3], 0  ;;  %s534_s0 = inlined_call_operand.vmem [shape: f32[8,128], index: 0, kind: input, shape index: {}]   ;;  %s535_s1 = inlined_call_operand.hbm [shape: f32[128,128], index: 1, kind: input, shape index: {}]   ;;  %s536_s2 = inlined_call_operand.vmem [shape: f32[1,128], index: 2, kind: input, shape index: {}]   ;;  %s537_s3 = inlined_call_operand.hbm [shape: f32[128,128], index: 3, kind: input, shape index: {}]   ;;  %s538_s4 = inlined_call_operand.vmem [shape: f32[1,128], index: 4, kind: input, shape index: {}]   ;;  %s539_s5 = inlined_call_operand.hbm [shape: f32[8,128], index: 5, kind: output, shape index: {}]  }
   0x1   :  { %11 = vsyncpa [#allocation6], 0 }
   0x2   :  { %12 = vsyncpa [#allocation4], 0  ;;  %s445_s18 = smov [#allocation2]  }
   0x3   :  { %s20_s19 = sshll.u32 %s445_s18, 4  ;;  %s21_s19 = int_to_ptr.vmem [resolvable:$true] %s20_s19 }
   0x4   :  { %s387_s20 = scalar_lea.vmem %s21_s19, 2048  ;;  %p392_p1 = scmp.lt.s32.totalorder %s21_s19, %s21_s19 }
   0x5   :  { %p388_p0 = scmp.ne.s32.totalorder %s21_s19, %s387_s20  ;;  %p393_p2 = scmp.lt.s32.totalorder %s387_s20, %s387_s20 }
   0x7   :  { %p394_p3 = por %p393_p2, %p392_p1 }
   0x9   :  { %p395_p4 = pnand %p394_p3, %p388_p0 }
   0xb   :  { %398 = shalt.err (!%p395_p4)
}
   0xc   :  { %s446_s21 = smov 128   ;;  %s447_s22 = smov 8  }
   0xd   :  { %26 = dma.hbm_to_vmem [thread:$0]  %s535_s1, 2048, %s21_s19, [#allocation3], %s446_s21, %s446_s21, %s447_s22  }
   0xe   :  { %s448_s25 = smov [#allocation5]  }
   0xf   :  { %s34_s26 = sshll.u32 %s448_s25, 4  ;;  %s35_s26 = int_to_ptr.vmem [resolvable:$true] %s34_s26 }
  0x10   :  { %s407_s27 = scalar_lea.vmem %s35_s26, 2048  ;;  %p412_p6 = scmp.lt.s32.totalorder %s35_s26, %s35_s26 }
  0x11   :  { %p408_p5 = scmp.ne.s32.totalorder %s35_s26, %s407_s27  ;;  %p413_p7 = scmp.lt.s32.totalorder %s407_s27, %s407_s27 }
  0x13   :  { %p414_p8 = por %p413_p7, %p412_p6 }
  0x15   :  { %p415_p9 = pnand %p414_p8, %p408_p5 }
  0x17   :  { %418 = shalt.err (!%p415_p9)
}
  0x18   :  { %40 = dma.hbm_to_vmem [thread:$0]  %s537_s3, 2048, %s35_s26, [#allocation6], %s446_s21, %s446_s21, %s447_s22  }
  0x19   :  { %439 = dma.done.wait [#allocation3], 2048  }
  0x1a   :  { %440 = vsyncadd [#allocation3], 4294965248 }
  0x1b   :  { %441 = dma.done.wait [#allocation6], 2048  }
  0x1c   :  { %442 = vsyncadd [#allocation6], 4294965248  ;;  %v449_v0 = vmov 0.0   ;;  %vm450_vm0 = vmmov 0   ;;  %v65_v1 = vld [vmem:[#allocation2 + $0x78] sm:$0xff]  ;;  %v64_v2 = vld [vmem:[#allocation2 + $0x70] sm:$0xff] }
  0x1d   :  { %302 = vmatprep.subr.mxu0 %v449_v0  ;;  %334 = vmatprep.mubr.msk.f32.mxu0 %vm450_vm0, %v449_v0  ;;  %v63_v3 = vld [vmem:[#allocation2 + $0x68] sm:$0xff]  ;;  %v62_v4 = vld [vmem:[#allocation2 + $0x60] sm:$0xff]  ;;  %v159_v5 = vld [vmem:[#allocation5 + $0x78] sm:$0xff]  ;;  %s451_s8 = smov [#allocation7]  }
  0x1e   :  { %337 = vmatprep.subr.mxu1 %v449_v0  ;;  %369 = vmatprep.mubr.msk.f32.mxu1 %vm450_vm0, %v449_v0  ;;  %v61_v6 = vld [vmem:[#allocation2 + $0x58] sm:$0xff]  ;;  %v158_v7 = vld [vmem:[#allocation5 + $0x70] sm:$0xff]  ;;  %v157_v8 = vld [vmem:[#allocation5 + $0x68] sm:$0xff]  ;;  %s256_s9 = sshll.u32 %s451_s8, 4  ;;  %s257_s9 = int_to_ptr.vmem [resolvable:$true] %s256_s9 }
  0x1f   :  { %303 = vmatpush3.msra.mxu0 %v65_v1  ;;  %338 = vmatpush3.msra.mxu1 %v159_v5  ;;  %v60_v9 = vld [vmem:[#allocation2 + $0x50] sm:$0xff]  ;;  %v156_v10 = vld [vmem:[#allocation5 + $0x60] sm:$0xff]  ;;  %v59_v11 = vld [vmem:[#allocation2 + $0x48] sm:$0xff]  ;;  %s419_s10 = scalar_lea.vmem %s257_s9, 128  ;;  %p424_p11 = scmp.lt.s32.totalorder %s257_s9, %s257_s9 }
  0x20   :  { %304 = vmatprep.subr.mxu0 %v449_v0  ;;  %339 = vmatprep.subr.mxu1 %v449_v0  ;;  %v155_v12 = vld [vmem:[#allocation5 + $0x58] sm:$0xff]  ;;  %v58_v13 = vld [vmem:[#allocation2 + $0x40] sm:$0xff]  ;;  %v154_v14 = vld [vmem:[#allocation5 + $0x50] sm:$0xff]  ;;  %p420_p10 = scmp.ne.s32.totalorder %s257_s9, %s419_s10  ;;  %p425_p12 = scmp.lt.s32.totalorder %s419_s10, %s419_s10 }
  0x21   :  { %305 = vmatpush3.msra.mxu0 %v64_v2  ;;  %340 = vmatpush3.msra.mxu1 %v158_v7  ;;  %v57_v15 = vld [vmem:[#allocation2 + $0x38] sm:$0xff]  ;;  %v153_v16 = vld [vmem:[#allocation5 + $0x48] sm:$0xff]  ;;  %v56_v17 = vld [vmem:[#allocation2 + $0x30] sm:$0xff] }
  0x22   :  { %306 = vmatprep.subr.mxu0 %v449_v0  ;;  %341 = vmatprep.subr.mxu1 %v449_v0  ;;  %v152_v18 = vld [vmem:[#allocation5 + $0x40] sm:$0xff]  ;;  %v55_v19 = vld [vmem:[#allocation2 + $0x28] sm:$0xff]  ;;  %v151_v20 = vld [vmem:[#allocation5 + $0x38] sm:$0xff]  ;;  %p426_p13 = por %p425_p12, %p424_p11 }
  0x23   :  { %307 = vmatpush3.msra.mxu0 %v63_v3  ;;  %342 = vmatpush3.msra.mxu1 %v157_v8  ;;  %v54_v21 = vld [vmem:[#allocation2 + $0x20] sm:$0xff]  ;;  %v150_v22 = vld [vmem:[#allocation5 + $0x30] sm:$0xff]  ;;  %v53_v23 = vld [vmem:[#allocation2 + $0x18] sm:$0xff] }
  0x24   :  { %308 = vmatprep.subr.mxu0 %v449_v0  ;;  %343 = vmatprep.subr.mxu1 %v449_v0  ;;  %v149_v24 = vld [vmem:[#allocation5 + $0x28] sm:$0xff]  ;;  %v52_v25 = vld [vmem:[#allocation2 + $0x10] sm:$0xff]  ;;  %v148_v26 = vld [vmem:[#allocation5 + $0x20] sm:$0xff]  ;;  %p427_p0 = pnand %p426_p13, %p420_p10 }
  0x25   :  { %309 = vmatpush3.msra.mxu0 %v62_v4  ;;  %344 = vmatpush3.msra.mxu1 %v156_v10  ;;  %v51_v27 = vld [vmem:[#allocation2 + $0x8] sm:$0xff]  ;;  %v147_v28 = vld [vmem:[#allocation5 + $0x18] sm:$0xff]  ;;  %v50_v29 = vld [vmem:[#allocation2] sm:$0xff] }
  0x26   :  { %310 = vmatprep.subr.mxu0 %v449_v0  ;;  %345 = vmatprep.subr.mxu1 %v449_v0  ;;  %v49_v30 = vld [vmem:[%s534_s0] sm:$0xff]  ;;  %v146_v31 = vld [vmem:[#allocation5 + $0x10] sm:$0xff]  ;;  %v145_v32 = vld [vmem:[#allocation5 + $0x8] sm:$0xff] }
  0x27   :  { %311 = vmatpush3.msra.mxu0 %v61_v6  ;;  %346 = vmatpush3.msra.mxu1 %v155_v12  ;;  %v144_v33 = vld [vmem:[#allocation5] sm:$0xff] }
  0x28   :  { %312 = vmatprep.subr.mxu0 %v449_v0  ;;  %347 = vmatprep.subr.mxu1 %v449_v0  ;;  %v266_v34 = vld [vmem:[%s536_s2] ss:$0 sm:$0xff] }
  0x29   :  { %313 = vmatpush3.msra.mxu0 %v60_v9  ;;  %348 = vmatpush3.msra.mxu1 %v154_v14  ;;  %v267_v39 = vld [vmem:[%s538_s4] ss:$0 sm:$0xff] }
  0x2a   :  { %314 = vmatprep.subr.mxu0 %v449_v0  ;;  %349 = vmatprep.subr.mxu1 %v449_v0 }
  0x2b   :  { %315 = vmatpush3.msra.mxu0 %v59_v11  ;;  %350 = vmatpush3.msra.mxu1 %v153_v16 }
  0x2c   :  { %316 = vmatprep.subr.mxu0 %v449_v0  ;;  %351 = vmatprep.subr.mxu1 %v449_v0 }
  0x2d   :  { %317 = vmatpush3.msra.mxu0 %v58_v13  ;;  %352 = vmatpush3.msra.mxu1 %v152_v18 }
  0x2e   :  { %318 = vmatprep.subr.mxu0 %v449_v0  ;;  %353 = vmatprep.subr.mxu1 %v449_v0 }
  0x2f   :  { %319 = vmatpush3.msra.mxu0 %v57_v15  ;;  %354 = vmatpush3.msra.mxu1 %v151_v20 }
  0x30   :  { %320 = vmatprep.subr.mxu0 %v449_v0  ;;  %355 = vmatprep.subr.mxu1 %v449_v0 }
  0x31   :  { %321 = vmatpush3.msra.mxu0 %v56_v17  ;;  %356 = vmatpush3.msra.mxu1 %v150_v22 }
  0x32   :  { %322 = vmatprep.subr.mxu0 %v449_v0  ;;  %357 = vmatprep.subr.mxu1 %v449_v0 }
  0x33   :  { %323 = vmatpush3.msra.mxu0 %v55_v19  ;;  %358 = vmatpush3.msra.mxu1 %v149_v24 }
  0x34   :  { %324 = vmatprep.subr.mxu0 %v449_v0  ;;  %359 = vmatprep.subr.mxu1 %v449_v0 }
  0x35   :  { %325 = vmatpush3.msra.mxu0 %v54_v21  ;;  %360 = vmatpush3.msra.mxu1 %v148_v26 }
  0x36   :  { %326 = vmatprep.subr.mxu0 %v449_v0  ;;  %361 = vmatprep.subr.mxu1 %v449_v0 }
  0x37   :  { %327 = vmatpush3.msra.mxu0 %v53_v23  ;;  %362 = vmatpush3.msra.mxu1 %v147_v28 }
  0x38   :  { %328 = vmatprep.subr.mxu0 %v449_v0  ;;  %363 = vmatprep.subr.mxu1 %v449_v0 }
  0x39   :  { %329 = vmatpush3.msra.mxu0 %v52_v25  ;;  %364 = vmatpush3.msra.mxu1 %v146_v31 }
  0x3a   :  { %330 = vmatprep.subr.mxu0 %v449_v0  ;;  %365 = vmatprep.subr.mxu1 %v449_v0 }
  0x3b   :  { %331 = vmatpush3.msra.mxu0 %v51_v27  ;;  %366 = vmatpush3.msra.mxu1 %v145_v32 }
  0x3c   :  { %332 = vmatprep.subr.mxu0 %v449_v0  ;;  %367 = vmatprep.subr.mxu1 %v449_v0 }
  0x3d   :  { %333 = vmatpush3.msra.mxu0 %v50_v29  ;;  %368 = vmatpush3.msra.mxu1 %v144_v33 }
  0x3e   :  { %335 = vmatmul.mubr.f32.vlgmr.msra.gmra.mxu0 %v49_v30 }
  0xfe   :  { %v139_v35 = vpop.f32.mrf.mxu0 }
  0xff   :  { %v140_v36 = vadd.f32 %v266_v34, %v139_v35 }
 0x100   :  { %v336_v37 = vpop.f32.mrf.mxu0 }
 0x101   :  { %v143_v38 = vmax.f32 %v140_v36, 0.0 }
 0x103   :  { %370 = vmatmul.mubr.f32.vlgmr.msra.gmra.mxu1 %v143_v38 }
 0x1c3   :  { %v226_v40 = vpop.f32.mrf.mxu1 }
 0x1c4   :  { %v241_v41 = vadd.f32 %v267_v39, %v226_v40 }
 0x1c5   :  { %v371_v42 = vpop.f32.mrf.mxu1 }
 0x1c6   :  { %242 = vst [vmem:[#allocation7] sm:$0xff] %v241_v41 }
 0x1c7   :  { %430 = shalt.err (!%p427_p0)
}
 0x1c8   :  { %259 = dma.vmem_to_hbm [thread:$0]  %s257_s9, 128, %s539_s5, [#allocation4]  }
 0x1c9   :  { %443 = dma.done.wait [#allocation4], 128  }
 0x1ca   :  { %444 = vsyncadd [#allocation4], 4294967168 }
 0x1cb   :  { %263 = vsyncpa [#allocation3], 1 }
 0x1cc   :  { %264 = vsyncpa [#allocation6], 1 }
 0x1cd   :  { %265 = vsyncpa [#allocation4], 1 }

</bundles_post_ra>
